<compile_context>
chip_gen: v7x
topology: tpu7x:2x2x1
jax: 0.10.0
libtpu: 0.0.40
codegen_flags: <defaults>
</compile_context>

<pallas_src>
import jax
import jax.numpy as jnp
from jax.experimental import pallas as pl
from jax.experimental.pallas import tpu as pltpu


def _prelu_kernel(w_ref, x_ref, o_ref):
    # w_ref: (tr, 1) per-row slope (row r <-> channel r % C), VMEM
    # x_ref / o_ref: (tr, tn) lane-dense tile, VMEM
    x = x_ref[...]
    w = w_ref[...]
    # PReLU: y = x if x >= 0 else a * x   (a broadcast along the lane axis)
    o_ref[...] = jnp.where(x >= 0, x, w * x)


def _best_tile(dim, align, cap):
    """Largest divisor of `dim` that is a multiple of `align` and <= `cap`.

    If `dim` is not divisible by `align`, returns `dim` itself (full-extent
    block, which is always legal for the Mosaic (8,128) tiling rule).
    """
    if dim <= 0 or dim % align != 0:
        return dim
    best = align
    i = 1
    while i * i <= dim:
        if dim % i == 0:
            for cand in (i, dim // i):
                if cand % align == 0 and cand <= cap and cand > best:
                    best = cand
        i += 1
    return best


# Bytes below which a single grid-less invocation is used (launch overhead
# dominates there; above it we want pipelining + both TCs on v7x).
_SMALL_BYTES = 1 << 20            # 1 MiB
# Per-block byte budget for the tiled path (x block; output block matches).
# 2x in + 2x out double-buffered blocks -> ~16 MiB resident: fits every gen.
_BLOCK_BUDGET_BYTES = 4 << 20     # 4 MiB
_MAX_LANE_TILE = 2048             # lanes; 512+ already saturates HBM BW
_VMEM_LIMIT_BYTES = 48 << 20      # explicit scoped-VMEM limit (safe on v5e..v7x)


def prelu_pallas(x, weight):
    """PReLU forward. x: (B, C, H, W), weight: (C,). Returns (B, C, H, W)."""
    B, C, H, W = x.shape
    assert weight.shape == (C,)

    N = H * W          # lane (fast) axis after flattening
    R = B * C          # row axis; row r uses slope weight[r % C]

    itemsize = jnp.dtype(x.dtype).itemsize
    sublane = {1: 32, 2: 16, 4: 8}.get(itemsize, 8)
    total_bytes = R * N * itemsize

    x2 = x.reshape(R, N)                        # free reshape (contiguous NCHW)
    w_rows = jnp.tile(weight, B).reshape(R, 1)  # per-row slope column

    if total_bytes <= _SMALL_BYTES:
        # Tiny input (the test case): single invocation, no grid, whole arrays
        # land in VMEM. No per-step overhead, full-width stores.
        out2 = pl.pallas_call(
            _prelu_kernel,
            out_shape=jax.ShapeDtypeStruct((R, N), x.dtype),
        )(w_rows, x2)
    else:
        # Tiled, double-buffered path: 2-D grid over (rows, lane columns).
        # Lane tile: multiple of 128, as large as possible up to 2048.
        tn = _best_tile(N, 128, max(128, min(N, _MAX_LANE_TILE)))
        # Row tile: fill the per-block byte budget given tn.
        row_cap = max(sublane, _BLOCK_BUDGET_BYTES // max(1, tn * itemsize))
        tr = _best_tile(R, sublane, min(R, row_cap))

        grid = (R // tr, N // tn)
        out2 = pl.pallas_call(
            _prelu_kernel,
            out_shape=jax.ShapeDtypeStruct((R, N), x.dtype),
            grid_spec=pl.GridSpec(
                grid=grid,
                in_specs=[
                    pl.BlockSpec((tr, 1), lambda i, j: (i, 0)),   # slopes
                    pl.BlockSpec((tr, tn), lambda i, j: (i, j)),  # x tile
                ],
                out_specs=pl.BlockSpec((tr, tn), lambda i, j: (i, j)),
            ),
            compiler_params=pltpu.CompilerParams(
                dimension_semantics=("parallel", "parallel"),
                vmem_limit_bytes=_VMEM_LIMIT_BYTES,
            ),
        )(w_rows, x2)

    return out2.reshape(B, C, H, W)


def _reference(x, weight):
    C = weight.shape[0]
    return jnp.where(x >= 0, x, weight.reshape(1, C, 1, 1) * x)


if __name__ == "__main__":
    num_params = 3
    key = jax.random.PRNGKey(0)

    # PyTorch default init is 0.25 for every channel; use distinct values to
    # exercise the per-channel broadcast path.
    weight = jnp.array([0.25, 0.25, 0.25], dtype=jnp.float32) + \
             jnp.arange(num_params, dtype=jnp.float32) * 0.1

    # --- small path (the test-case shape) -----------------------------------
    B, C, H, W = 2, num_params, 16, 16
    x_small = jax.random.normal(key, (B, C, H, W), dtype=jnp.float32)
    out_small = jax.block_until_ready(prelu_pallas(x_small, weight))
    assert out_small.shape == (B, C, H, W)
    assert jnp.allclose(out_small, _reference(x_small, weight),
                        atol=1e-6, rtol=1e-6)

    # --- tiled path (modest size, > 1 MiB, exercises the 2-D grid) ----------
    B2, H2, W2 = 4, 128, 256
    x_big = jax.random.normal(jax.random.PRNGKey(1),
                              (B2, num_params, H2, W2), dtype=jnp.float32)
    out_big = jax.block_until_ready(prelu_pallas(x_big, weight))
    assert out_big.shape == (B2, num_params, H2, W2)
    assert jnp.allclose(out_big, _reference(x_big, weight),
                        atol=1e-6, rtol=1e-6)

    print("KERNEL_OK")
</pallas_src>

<mosaic_0001>
module attributes {stable_mosaic.version = 11 : i64} {
  func.func @_prelu_kernel(%arg0: memref<6x1xf32, #tpu.memory_space<vmem>>, %arg1: memref<6x256xf32, #tpu.memory_space<vmem>>, %arg2: memref<6x256xf32, #tpu.memory_space<vmem>>) attributes {dimension_semantics = [], scalar_prefetch = 0 : i64, scratch_operands = 0 : i64, tpu.core_type = #tpu.core_type<tc>} {
    %c0 = arith.constant 0 : index
    %c0_0 = arith.constant 0 : index
    %0 = vector.load %arg1[%c0, %c0_0] : memref<6x256xf32, #tpu.memory_space<vmem>>, vector<6x256xf32>
    %c0_1 = arith.constant 0 : index
    %c0_2 = arith.constant 0 : index
    %1 = vector.load %arg0[%c0_1, %c0_2] : memref<6x1xf32, #tpu.memory_space<vmem>>, vector<6x1xf32>
    %cst = arith.constant 0.000000e+00 : f32
    %2 = vector.broadcast %cst : f32 to vector<6x256xf32>
    %3 = arith.cmpf oge, %0, %2 : vector<6x256xf32>
    %4 = vector.broadcast %1 : vector<6x1xf32> to vector<6x256xf32>
    %5 = arith.mulf %4, %0 : vector<6x256xf32>
    %6 = arith.select %3, %0, %5 : vector<6x256xi1>, vector<6x256xf32>
    %c0_3 = arith.constant 0 : index
    %c0_4 = arith.constant 0 : index
    %7 = vector.load %arg2[%c0_3, %c0_4] : memref<6x256xf32, #tpu.memory_space<vmem>>, vector<6x256xf32>
    tpu.vector_store %arg2[%c0_3, %c0_4], %6 {strides = array<i32>} : memref<6x256xf32, #tpu.memory_space<vmem>>, vector<6x256xf32>,
    return
  }
}

</mosaic_0001>

<bundles_post_ra>
// kernel: tpu_custom_call.1
= control target key start
LH: loop header
LB: loop body
LE: loop exit
PB: predicated region body
PF: predicated region fallthrough
CT: control target
= control target key end

     0   :  { %7 = vsyncpa [#allocation3], 0  ;;  %s152_s0 = inlined_call_operand.vmem [shape: f32[6,1], index: 0, kind: input, shape index: {}]   ;;  %s153_s1 = inlined_call_operand.hbm [shape: f32[6,256], index: 1, kind: input, shape index: {}]   ;;  %s154_s2 = inlined_call_operand.hbm [shape: f32[6,256], index: 2, kind: output, shape index: {}]  }
   0x1   :  { %8 = vsyncpa [#allocation4], 0  ;;  %s107_s9 = smov [#allocation2]   ;;  %s59_s13 = scalar_lea.hbm %s153_s1, 256 }
   0x2   :  { %s17_s10 = sshll.u32 %s107_s9, 4  ;;  %p60_p0 = scmp.ne.s32.totalorder %s153_s1, %s59_s13  ;;  %s18_s10 = int_to_ptr.vmem [resolvable:$true] %s17_s10 }
   0x3   :  { %p63_p1 = scmp.lt.u32.totalorder %s59_s13, %s153_s1 }
   0x5   :  { %p65_p2 = pnand %p63_p1, %p60_p0 }
   0x7   :  { %68 = shalt.err (!%p65_p2)
}
   0x8   :  { %s69_s18 = scalar_lea.vmem %s18_s10, 256  ;;  %p74_p4 = scmp.lt.s32.totalorder %s18_s10, %s18_s10 }
   0x9   :  { %p70_p3 = scmp.ne.s32.totalorder %s18_s10, %s69_s18  ;;  %p75_p5 = scmp.lt.s32.totalorder %s69_s18, %s69_s18 }
   0xb   :  { %p76_p6 = por %p75_p5, %p74_p4 }
   0xd   :  { %p77_p7 = pnand %p76_p6, %p70_p3 }
   0xf   :  { %80 = shalt.err (!%p77_p7)
}
  0x10   :  { %20 = dma.hbm_to_vmem [thread:$0]  %s153_s1, 256, %s18_s10, [#allocation3]  }
  0x11   :  { %103 = dma.done.wait [#allocation3], 256  }
  0x12   :  { %104 = vsyncadd [#allocation3], 4294967040  ;;  %v108_v0 = vmov 0   ;;  %v26_v1 = vld [vmem:[%s152_s0] sm:$0x3f]  ;;  %s109_s23 = smov [#allocation5]  }
  0x13   :  { %58 = vset.pattern.permute.xlu0 %v108_v0  ;;  %v24_v2 = vld [vmem:[#allocation2] sm:$0x3f]  ;;  %v25_v3 = vld [vmem:[#allocation2 + $0x8] sm:$0x3f]  ;;  %s46_s24 = sshll.u32 %s109_s23, 4  ;;  %s47_s24 = int_to_ptr.vmem [resolvable:$true] %s46_s24 }
  0x14   :  { %31 = vperm.xlu0 %58, %v26_v1   ;;  %vm27_vm0 = vcmp.ge.f32.partialorder %v24_v2, 0.0  ;;  %vm28_vm1 = vcmp.ge.f32.partialorder %v25_v3, 0.0  ;;  %s81_s1 = scalar_lea.vmem %s47_s24, 256  ;;  %p86_p9 = scmp.lt.s32.totalorder %s47_s24, %s47_s24 }
  0x15   :  { %p82_p8 = scmp.ne.s32.totalorder %s47_s24, %s81_s1  ;;  %p87_p10 = scmp.lt.s32.totalorder %s81_s1, %s81_s1 }
  0x17   :  { %p88_p11 = por %p87_p10, %p86_p9 }
  0x19   :  { %p89_p12 = pnand %p88_p11, %p82_p8 }
  0x93   :  { %v32_v4 = vpop.permute.xlu0 %31 }
  0x94   :  { %v34_v5 = vmul.f32 %v32_v4, %v24_v2  ;;  %v35_v6 = vmul.f32 %v32_v4, %v25_v3 }
  0x96   :  { %v36_v7 = vsel %vm27_vm0, %v24_v2, %v34_v5  ;;  %v37_v8 = vsel %vm28_vm1, %v25_v3, %v35_v6 }
  0x97   :  { %38 = vst [vmem:[#allocation5] sm:$0x3f] %v36_v7  ;;  %39 = vst [vmem:[#allocation5 + $0x8] sm:$0x3f] %v37_v8 }
  0x98   :  { %92 = shalt.err (!%p89_p12)
}
  0x99   :  { %s93_s26 = scalar_lea.hbm %s154_s2, 256 }
  0x9a   :  { %p94_p13 = scmp.ne.s32.totalorder %s154_s2, %s93_s26  ;;  %p97_p0 = scmp.lt.u32.totalorder %s93_s26, %s154_s2 }
  0x9c   :  { %p99_p1 = pnand %p97_p0, %p94_p13 }
  0x9e   :  { %102 = shalt.err (!%p99_p1)
}
  0x9f   :  { %49 = dma.vmem_to_hbm [thread:$0]  %s47_s24, 256, %s154_s2, [#allocation4]  }
  0xa0   :  { %105 = dma.done.wait [#allocation4], 256  }
  0xa1   :  { %106 = vsyncadd [#allocation4], 4294967040 }
  0xa2   :  { %53 = vsyncpa [#allocation3], 1 }
  0xa3   :  { %54 = vsyncpa [#allocation4], 1 }

</bundles_post_ra>
